<compile_context>
chip_gen: v7x
topology: tpu7x:2x2x1
jax: 0.10.0
libtpu: 0.0.40
codegen_flags: <defaults>
</compile_context>

<pallas_src>
import jax
import jax.numpy as jnp
from jax.experimental import pallas as pl
from jax.experimental.pallas import tpu as pltpu


def _transition_kernel(m_ref, s_ref, at_ref, g_ref, b_ref, f_ref, ff_ref):
    # m_ref  : (Rb, K)     tile of means
    # s_ref  : (Rb, K*K)   tile of flattened covariances
    # at_ref : (K, K)      A^T (pre-transposed in wrapper; grid-resident)
    # g_ref  : (1, K*K)    flattened G = A^T A (grid-resident)
    # b_ref  : (1, K)      bias (grid-resident)
    # f_ref  : (Rb, K)     E[f(x)] tile
    # ff_ref : (Rb, 1)     E[f(x)'f(x)] tile
    m = m_ref[...]
    # E[A x + b] for the whole tile: one (Rb,K)@(K,K) MXU matmul.
    fm = jnp.dot(m, at_ref[...], preferred_element_type=jnp.float32) + b_ref[...]
    f_ref[...] = fm.astype(f_ref.dtype)

    # ||A m + b||^2 per row (VPU mul + lane reduce).
    quad = jnp.sum(fm * fm, axis=-1, keepdims=True)                    # (Rb, 1)
    # tr(A S A^T) = <A^T A, S> per row (S symmetric), VPU mul + lane reduce.
    tr = jnp.sum(s_ref[...] * g_ref[...], axis=-1, keepdims=True)      # (Rb, 1)
    ff_ref[...] = (quad + tr).astype(ff_ref.dtype)


def transition_forward(m, S, A, b, *, block_rows=2048):
    """Linear-Gaussian transition forward pass.

    Returns (f, ff, dfdx, prior) with shapes (R,1,K), (R,1,1), (R,K,K), (1,1).
    """
    R, one, K = m.shape
    assert one == 1 and S.shape == (R, K, K)
    assert A.shape == (K, K) and b.shape == (1, K)
    dtype = m.dtype

    # Row-tile size: multiple of 8 (sublane), capped at block_rows.  With K=8
    # even Rb=2048 keeps double-buffered tiles (~1.3 MiB) far below the scoped
    # VMEM default on every generation (incl. v7x's 64 MiB physical VMEM).
    # R need not divide Rb: Pallas masks the ragged last block, so no
    # wrapper-side padding copy of S is required.
    Rb = max(8, min(block_rows, -(-R // 8) * 8))
    T = pl.cdiv(R, Rb)

    # Free (contiguous) reshapes to lane-dense 2-D slabs.
    m2d = m.reshape(R, K)
    S2d = S.reshape(R, K * K)

    A_T = A.T                              # hoisted: no per-step transpose
    g = (A.T @ A).reshape(1, K * K)        # G = A^T A, flattened

    grid_spec = pltpu.PrefetchScalarGridSpec(
        num_scalar_prefetch=0,
        grid=(T,),
        in_specs=[
            pl.BlockSpec((Rb, K), lambda t: (t, 0)),        # m tile
            pl.BlockSpec((Rb, K * K), lambda t: (t, 0)),    # S tile (flattened)
            pl.BlockSpec((K, K), lambda t: (0, 0)),         # A^T (grid-resident)
            pl.BlockSpec((1, K * K), lambda t: (0, 0)),     # G   (grid-resident)
            pl.BlockSpec((1, K), lambda t: (0, 0)),         # b   (grid-resident)
        ],
        out_specs=[
            pl.BlockSpec((Rb, K), lambda t: (t, 0)),        # f tile
            pl.BlockSpec((Rb, 1), lambda t: (t, 0)),        # ff tile
        ],
    )

    f2d, ff2d = pl.pallas_call(
        _transition_kernel,
        out_shape=(
            jax.ShapeDtypeStruct((R, K), dtype),
            jax.ShapeDtypeStruct((R, 1), dtype),
        ),
        grid_spec=grid_spec,
        compiler_params=pltpu.CompilerParams(
            dimension_semantics=("parallel",)),  # megacore sharding on v7x
    )(m2d, S2d, A_T, g, b)

    f = f2d.reshape(R, 1, K)
    ff = ff2d.reshape(R, 1, 1)
    # dfdx is the constant A for a linear transition: broadcast in the wrapper
    # instead of writing R copies of it from the kernel.
    dfdx = jnp.broadcast_to(A, (R, K, K))
    prior = jnp.zeros((1, 1), dtype=dtype)       # log_prior_distribution()
    # TODO(synk): base-class gradient helpers (dfdS, dffdm, ...) are not part
    # of forward() and are left to JAX autodiff on this wrapper.
    return f, ff, dfdx, prior


if __name__ == "__main__":
    R, K = 300, 8       # non-multiple of tile -> exercises ragged multi-step grid
    key = jax.random.PRNGKey(0)
    k_m, k_L, k_A, k_b = jax.random.split(key, 4)

    m = jax.random.normal(k_m, (R, 1, K), dtype=jnp.float32)
    L = 0.1 * jax.random.normal(k_L, (R, K, K), dtype=jnp.float32)
    S = jnp.einsum("rij,rkj->rik", L, L) + 0.5 * jnp.eye(K, dtype=jnp.float32)

    A = 0.3 * jax.random.normal(k_A, (K, K), dtype=jnp.float32)
    b = 0.1 * jax.random.normal(k_b, (1, K), dtype=jnp.float32)

    f, ff, dfdx, prior = transition_forward(m, S, A, b, block_rows=128)
    jax.block_until_ready((f, ff, dfdx, prior))

    # Pure-JAX reference
    f_ref = jnp.einsum("rok,jk->roj", m, A) + b
    ff_ref = (jnp.sum(f_ref * f_ref, axis=-1, keepdims=True)
              + jnp.einsum("ij,rjk,ik->r", A, S, A)[:, None, None])
    dfdx_ref = jnp.broadcast_to(A, (R, K, K))

    assert f.shape == (R, 1, K) and ff.shape == (R, 1, 1)
    assert dfdx.shape == (R, K, K) and prior.shape == (1, 1)
    assert jnp.allclose(f, f_ref, atol=1e-5)
    assert jnp.allclose(ff, ff_ref, atol=1e-5)
    assert jnp.allclose(dfdx, dfdx_ref, atol=1e-6)

    print("KERNEL_OK")
</pallas_src>

<mosaic_0001>
module attributes {stable_mosaic.version = 11 : i64} {
  func.func @_transition_kernel(%arg0: i32, %arg1: memref<128x8xf32, #tpu.memory_space<vmem>>, %arg2: memref<128x64xf32, #tpu.memory_space<vmem>>, %arg3: memref<8x8xf32, #tpu.memory_space<vmem>>, %arg4: memref<1x64xf32, #tpu.memory_space<vmem>>, %arg5: memref<1x8xf32, #tpu.memory_space<vmem>>, %arg6: memref<128x8xf32, #tpu.memory_space<vmem>>, %arg7: memref<128x1xf32, #tpu.memory_space<vmem>>) attributes {dimension_semantics = [#tpu.dimension_semantics<parallel>], iteration_bounds = array<i64: 3>, scalar_prefetch = 0 : i64, scratch_operands = 0 : i64, tpu.core_type = #tpu.core_type<tc>, window_params = [{transform_indices = @transform_0, window_bounds = array<i64: 128, 8>}, {transform_indices = @transform_1, window_bounds = array<i64: 128, 64>}, {pipeline_mode = #tpu.pipeline_mode<synchronous>, transform_indices = @transform_2, window_bounds = array<i64: 8, 8>}, {pipeline_mode = #tpu.pipeline_mode<synchronous>, transform_indices = @transform_3, window_bounds = array<i64: 1, 64>}, {pipeline_mode = #tpu.pipeline_mode<synchronous>, transform_indices = @transform_4, window_bounds = array<i64: 1, 8>}, {transform_indices = @transform_5, window_bounds = array<i64: 128, 8>}, {transform_indices = @transform_6, window_bounds = array<i64: 128, 1>}]} {
    %c0 = arith.constant 0 : index
    %c0_0 = arith.constant 0 : index
    %0 = vector.load %arg1[%c0, %c0_0] : memref<128x8xf32, #tpu.memory_space<vmem>>, vector<128x8xf32>
    %c0_1 = arith.constant 0 : index
    %c0_2 = arith.constant 0 : index
    %1 = vector.load %arg3[%c0_1, %c0_2] : memref<8x8xf32, #tpu.memory_space<vmem>>, vector<8x8xf32>
    %cst = arith.constant dense<0.000000e+00> : vector<128x8xf32>
    %2 = tpu.matmul %0, %1, %cst {dimension_numbers = #tpu.dot_dimension_numbers<[1], [0], [0], [1], [0, 0, 1, 1], [], []>} : vector<128x8xf32>, vector<8x8xf32>, vector<128x8xf32> -> vector<128x8xf32>
    %c0_3 = arith.constant 0 : index
    %c0_4 = arith.constant 0 : index
    %3 = vector.load %arg5[%c0_3, %c0_4] : memref<1x8xf32, #tpu.memory_space<vmem>>, vector<1x8xf32>
    %4 = vector.broadcast %3 : vector<1x8xf32> to vector<128x8xf32>
    %5 = arith.addf %2, %4 : vector<128x8xf32>
    %c0_5 = arith.constant 0 : index
    %c0_6 = arith.constant 0 : index
    %6 = vector.load %arg6[%c0_5, %c0_6] : memref<128x8xf32, #tpu.memory_space<vmem>>, vector<128x8xf32>
    tpu.vector_store %arg6[%c0_5, %c0_6], %5 {strides = array<i32>} : memref<128x8xf32, #tpu.memory_space<vmem>>, vector<128x8xf32>,
    %7 = arith.mulf %5, %5 : vector<128x8xf32>
    %cst_7 = arith.constant dense<0.000000e+00> : vector<128xf32>
    %8 = vector.multi_reduction <add>, %7, %cst_7 [1] : vector<128x8xf32> to vector<128xf32>
    %9 = vector.shape_cast %8 : vector<128xf32> to vector<128x1xf32>
    %c0_8 = arith.constant 0 : index
    %c0_9 = arith.constant 0 : index
    %10 = vector.load %arg2[%c0_8, %c0_9] : memref<128x64xf32, #tpu.memory_space<vmem>>, vector<128x64xf32>
    %c0_10 = arith.constant 0 : index
    %c0_11 = arith.constant 0 : index
    %11 = vector.load %arg4[%c0_10, %c0_11] : memref<1x64xf32, #tpu.memory_space<vmem>>, vector<1x64xf32>
    %12 = vector.broadcast %11 : vector<1x64xf32> to vector<128x64xf32>
    %13 = arith.mulf %10, %12 : vector<128x64xf32>
    %cst_12 = arith.constant dense<0.000000e+00> : vector<128xf32>
    %14 = vector.multi_reduction <add>, %13, %cst_12 [1] : vector<128x64xf32> to vector<128xf32>
    %15 = vector.shape_cast %14 : vector<128xf32> to vector<128x1xf32>
    %16 = arith.addf %9, %15 : vector<128x1xf32>
    %c0_13 = arith.constant 0 : index
    %c0_14 = arith.constant 0 : index
    %17 = vector.load %arg7[%c0_13, %c0_14] : memref<128x1xf32, #tpu.memory_space<vmem>>, vector<128x1xf32>
    tpu.vector_store %arg7[%c0_13, %c0_14], %16 {strides = array<i32>} : memref<128x1xf32, #tpu.memory_space<vmem>>, vector<128x1xf32>,
    return
  }
  func.func @transform_0(%arg0: i32) -> (i32, i32) {
    %c0_i32 = arith.constant 0 : i32
    %c0_i32_0 = arith.constant 0 : i32
    return %arg0, %c0_i32 : i32, i32
  }
  func.func @transform_1(%arg0: i32) -> (i32, i32) {
    %c0_i32 = arith.constant 0 : i32
    %c0_i32_0 = arith.constant 0 : i32
    return %arg0, %c0_i32 : i32, i32
  }
  func.func @transform_2(%arg0: i32) -> (i32, i32) {
    %c0_i32 = arith.constant 0 : i32
    %c0_i32_0 = arith.constant 0 : i32
    %c0_i32_1 = arith.constant 0 : i32
    return %c0_i32, %c0_i32_0 : i32, i32
  }
  func.func @transform_3(%arg0: i32) -> (i32, i32) {
    %c0_i32 = arith.constant 0 : i32
    %c0_i32_0 = arith.constant 0 : i32
    %c0_i32_1 = arith.constant 0 : i32
    return %c0_i32, %c0_i32_0 : i32, i32
  }
  func.func @transform_4(%arg0: i32) -> (i32, i32) {
    %c0_i32 = arith.constant 0 : i32
    %c0_i32_0 = arith.constant 0 : i32
    %c0_i32_1 = arith.constant 0 : i32
    return %c0_i32, %c0_i32_0 : i32, i32
  }
  func.func @transform_5(%arg0: i32) -> (i32, i32) {
    %c0_i32 = arith.constant 0 : i32
    %c0_i32_0 = arith.constant 0 : i32
    return %arg0, %c0_i32 : i32, i32
  }
  func.func @transform_6(%arg0: i32) -> (i32, i32) {
    %c0_i32 = arith.constant 0 : i32
    %c0_i32_0 = arith.constant 0 : i32
    return %arg0, %c0_i32 : i32, i32
  }
}

</mosaic_0001>

<bundles_post_ra>
// kernel: tpu_custom_call.1
= control target key start
LH: loop header
LB: loop body
LE: loop exit
PB: predicated region body
PF: predicated region fallthrough
CT: control target
= control target key end

     0   :  { %s1735_s21 = smov 0   ;;  %s1737_s22 = smov 0   ;;  %s2167_s0 = inlined_call_operand.vmem [shape: f32[300,8], index: 0, kind: input, shape index: {}]   ;;  %s2168_s1 = inlined_call_operand.vmem [shape: f32[300,64], index: 1, kind: input, shape index: {}]   ;;  %s2169_s2 = inlined_call_operand.vmem [shape: f32[8,8], index: 2, kind: input, shape index: {}]   ;;  %s2170_s3 = inlined_call_operand.vmem [shape: f32[1,64], index: 3, kind: input, shape index: {}]   ;;  %s2171_s4 = inlined_call_operand.vmem [shape: f32[1,8], index: 4, kind: input, shape index: {}]   ;;  %s2172_s5 = inlined_call_operand.vmem [shape: f32[300,8], index: 5, kind: output, shape index: {0}]   ;;  %s2173_s6 = inlined_call_operand.vmem [shape: f32[300,1], index: 6, kind: output, shape index: {1}]  }
   0x1   :  { %s1739_s23 = smov 0  }
   0x2 LB: > { %s1748_s24 = sadd.s32 4294967295, %s1634_s23   ;;  %s1750_s25 = sadd.s32 1, %s1634_s23   ;;  %s1634_s23 = sphi %s1739_s23, %s2183_s23   ;;  %s1630_s22 = sphi %s1737_s22, %s2182_s22   ;;  %s1626_s21 = sphi %s1735_s21, %s2181_s21  }
   0x3   : > { %s136_s26 = ssub.s32 %s1634_s23, %s1750_s25  ;;  %s139_s27 = sadd.s32 1, %s1630_s22 }
   0x4   : > { %p137_p0 = scmp.eq.s32.totalorder %s136_s26, 0  ;;  %p149_p1 = scmp.ne.s32.totalorder %s1630_s22, %s1626_s21 }
   0x5   : > { %p150_p2 = scmp.eq.s32.totalorder %s1748_s24, 2  ;;  %p1288_p3 = scmp.ge.s32.totalorder %s1634_s23, 1 }
   0x6   : > { %s1758_s28 = scalar_select %p137_p0, %s1630_s22, %s139_s27  }
   0x7   : > { %p1760_p4 = por %p150_p2, %p149_p1  ;;  %p243_p5 = scmp.lt.s32.totalorder %s1634_s23, 4 }
   0x9   : > { %p244_p6 = pnand %p1288_p3, %p243_p5 }
   0xa   : > { %v343_v0 = vld [vmem:[%s2169_s2] sm:$0xff] (!%p244_p6)  ;;  %s1768_s8 = sshll.u32 (!%p244_p6), %s1748_s24, 4  ;;  %vm351_vm0 = vcmask (!%p244_p6), 64512   ;;  %vm664_vm1 = vcmask (!%p244_p6), 523264   ;;  %s280_s19 = sand.u32 (!%p244_p6), 1, %s1626_s21   ;;  %vm729_vm2 = vcmask (!%p244_p6), 7168  }
   0xb   : > { %247 = sbr.rel (%p244_p6) target bundleno = 524 (0x20c), region = 40  ;;  %1368 = vmatprep.subr.mxu0 (!%p244_p6), %v343_v0  ;;  %1394 = vmatprep.subr.mxu1 (!%p244_p6), %v343_v0  ;;  %p294_p7 = scmp.lt.s32.totalorder (!%p244_p6), %s1768_s8, 37  ;;  %v1799_v9 = vld [vmem:[%s2170_s3] ss:$0 sm:$0xff] (!%p244_p6) }
   0xc   : > { %1369 = vmatpush3.msra.mxu0 (!%p244_p6), %v343_v0  ;;  %1395 = vmatpush3.msra.mxu1 (!%p244_p6), %v343_v0  ;;  %s1862_s20 = sshll.u32 (!%p244_p6), %s280_s19, 7  ;;  %v1867_v60 = vld [vmem:[%s2171_s4] ss:$0 sm:$0xff] (!%p244_p6) }
   0xd   : > { %s1874_s21 = scalar_lea.vmem (!%p244_p6), [#allocation2], %s1862_s20   ;;  %s1943_s27 = scalar_lea.vmem (!%p244_p6), [#allocation3], %s1862_s20  }
  0x12   : > { %s295_s9 = scalar_select %p294_p7, %s1768_s8, 37 }
  0x13   : > { %s758_s30 = ssub.s32 (%p1760_p4), 38, %s1768_s8  ;;  %s1345_s7 = sshll.u32 (%p1760_p4), %s1748_s24, 7 }
  0x14   : > { %s1292_s10 = sshll.u32 %s295_s9, 3  ;;  %p759_p8 = scmp.lt.s32.totalorder (%p1760_p4), %s758_s30, 16 }
  0x15   : > { %s1775_s13 = scalar_lea.vmem %s2167_s0, %s1292_s10  ;;  %s1787_s16 = scalar_lea.vmem %s2168_s1, %s1292_s10 }
  0x16   : > { %v327_v1 = vld [vmem:[%s1775_s13] sm:$0xff]  ;;  %v328_v3 = vld [vmem:[%s1775_s13 + $0x8] sm:$0xff]  ;;  %v329_v5 = vld [vmem:[%s1775_s13 + $0x10] sm:$0xff]  ;;  %s1984_s11 = scalar_lea.vmem (%p1760_p4), %s2172_s5, %s1345_s7  }
  0x17   : > { %v335_v2 = vld [vmem:[%s1775_s13 + $0x40] sm:$0xff]  ;;  %1370 = vmatprep.mubr.msk.f32.mxu0 %vm351_vm0, %v327_v1  ;;  %v336_v4 = vld [vmem:[%s1775_s13 + $0x48] sm:$0xff]  ;;  %v337_v6 = vld [vmem:[%s1775_s13 + $0x50] sm:$0xff] }
  0x18   : > { %1382 = vmatprep.mubr.msk.f32.mxu1 %vm351_vm0, %v335_v2  ;;  %1371 = vmatmul.mubr.msk.f32.vlgmr.msra.gmra.mrb[0].mxu0 %vm351_vm0, %v328_v3  ;;  %v330_v7 = vld [vmem:[%s1775_s13 + $0x18] sm:$0xff]  ;;  %v331_v10 = vld [vmem:[%s1775_s13 + $0x20] sm:$0xff]  ;;  %v626_v12 = vld [vmem:[%s1787_s16 + $0x8] sm:$0xff] }
  0x19   : > { %1383 = vmatmul.mubr.msk.f32.vlgmr.msra.gmra.mrb[0].mxu1 %vm351_vm0, %v336_v4  ;;  %1373 = vmatprep.mubr.msk.f32.mxu0 %vm351_vm0, %v329_v5  ;;  %v338_v8 = vld [vmem:[%s1775_s13 + $0x58] sm:$0xff]  ;;  %v339_v11 = vld [vmem:[%s1775_s13 + $0x60] sm:$0xff]  ;;  %v332_v14 = vld [vmem:[%s1775_s13 + $0x28] sm:$0xff]  ;;  %v649_v15 = vmul.f32 %v1799_v9, %v626_v12 }
  0x1a   : > { %1385 = vmatprep.mubr.msk.f32.mxu1 %vm351_vm0, %v337_v6  ;;  %v625_v13 = vld [vmem:[%s1787_s16] sm:$0xff]  ;;  %v628_v17 = vld [vmem:[%s1787_s16 + $0x18] sm:$0xff]  ;;  %v627_v18 = vld [vmem:[%s1787_s16 + $0x10] sm:$0xff] }
  0x1b   : > { %v648_v16 = vmul.f32 %v1799_v9, %v625_v13  ;;  %v340_v19 = vld [vmem:[%s1775_s13 + $0x68] sm:$0xff]  ;;  %v651_v20 = vmul.f32 %v1799_v9, %v628_v17  ;;  %v650_v21 = vmul.f32 %v1799_v9, %v627_v18  ;;  %v629_v23 = vld [vmem:[%s1787_s16 + $0x20] sm:$0xff]  ;;  %v333_v24 = vld [vmem:[%s1775_s13 + $0x30] sm:$0xff]  ;;  %v668_v26 = vsel %vm664_vm1, %v649_v15, 0.0 }
  0x1c   : > { %1374 = vmatmul.mubr.msk.f32.gmra.mrb[2].mxu0 %vm351_vm0, %v330_v7  ;;  %v630_v22 = vld [vmem:[%s1787_s16 + $0x28] sm:$0xff]  ;;  %v341_v25 = vld [vmem:[%s1775_s13 + $0x70] sm:$0xff]  ;;  %669 = vadd.xlane.f32.xlu1 %v668_v26  ;;  %v334_v28 = vld [vmem:[%s1775_s13 + $0x38] sm:$0xff]  ;;  %v652_v32 = vmul.f32 %v1799_v9, %v629_v23 }
  0x1d   : > { %1386 = vmatmul.mubr.msk.f32.gmra.mrb[2].mxu1 %vm351_vm0, %v338_v8  ;;  %1376 = vmatprep.mubr.msk.f32.mxu0 %vm351_vm0, %v331_v10  ;;  %v665_v27 = vsel %vm664_vm1, %v648_v16, 0.0  ;;  %v674_v29 = vsel %vm664_vm1, %v651_v20, 0.0  ;;  %v671_v30 = vsel %vm664_vm1, %v650_v21, 0.0  ;;  %v653_v31 = vmul.f32 %v1799_v9, %v630_v22  ;;  %v342_v33 = vld [vmem:[%s1775_s13 + $0x78] sm:$0xff]  ;;  %v631_v35 = vld [vmem:[%s1787_s16 + $0x30] sm:$0xff]  ;;  %v634_v40 = vld [vmem:[%s1787_s16 + $0x48] sm:$0xff] }
  0x1e   : > { %1388 = vmatprep.mubr.msk.f32.mxu1 %vm351_vm0, %v339_v11  ;;  %666 = vadd.xlane.f32.xlu0 %v665_v27  ;;  %v632_v34 = vld [vmem:[%s1787_s16 + $0x38] sm:$0xff]  ;;  %v677_v37 = vsel %vm664_vm1, %v652_v32, 0.0  ;;  %v654_v39 = vmul.f32 %v1799_v9, %v631_v35  ;;  %v633_v41 = vld [vmem:[%s1787_s16 + $0x40] sm:$0xff]  ;;  %v657_v44 = vmul.f32 %v1799_v9, %v634_v40  ;;  %v635_v47 = vld [vmem:[%s1787_s16 + $0x50] sm:$0xff] }
  0x1f   : > { %v680_v36 = vsel %vm664_vm1, %v653_v31, 0.0  ;;  %v655_v38 = vmul.f32 %v1799_v9, %v632_v34  ;;  %v656_v45 = vmul.f32 %v1799_v9, %v633_v41  ;;  %v636_v46 = vld [vmem:[%s1787_s16 + $0x58] sm:$0xff]  ;;  %v658_v51 = vmul.f32 %v1799_v9, %v635_v47  ;;  %v638_v54 = vld [vmem:[%s1787_s16 + $0x68] sm:$0xff]  ;;  %v637_v55 = vld [vmem:[%s1787_s16 + $0x60] sm:$0xff] }
  0x20   : > { %1377 = vmatmul.mubr.msk.f32.gmra.mrb[4].mxu0 %vm351_vm0, %v332_v14  ;;  %675 = vadd.xlane.f32.xlu1 %v674_v29  ;;  %v683_v43 = vsel %vm664_vm1, %v654_v39, 0.0  ;;  %v692_v48 = vsel %vm664_vm1, %v657_v44, 0.0  ;;  %v659_v50 = vmul.f32 %v1799_v9, %v636_v46  ;;  %v661_v56 = vmul.f32 %v1799_v9, %v638_v54 }
  0x21   : > { %1389 = vmatmul.mubr.msk.f32.gmra.mrb[4].mxu1 %vm351_vm0, %v340_v19  ;;  %1379 = vmatprep.mubr.msk.f32.mxu0 %vm351_vm0, %v333_v24  ;;  %v686_v42 = vsel %vm664_vm1, %v655_v38, 0.0  ;;  %v689_v49 = vsel %vm664_vm1, %v656_v45, 0.0  ;;  %v695_v53 = vsel %vm664_vm1, %v658_v51, 0.0  ;;  %v660_v57 = vmul.f32 %v1799_v9, %v637_v55 }
  0x22   : > { %1391 = vmatprep.mubr.msk.f32.mxu1 %vm351_vm0, %v341_v25  ;;  %672 = vadd.xlane.f32.xlu0 %v671_v30  ;;  %v698_v52 = vsel %vm664_vm1, %v659_v50, 0.0  ;;  %v704_v58 = vsel %vm664_vm1, %v661_v56, 0.0 }
  0x23   : > { %v701_v59 = vsel %vm664_vm1, %v660_v57, 0.0 }
  0x24   : > { %1380 = vmatmul.mubr.msk.f32.gmra.mrb[6].mxu0 %vm351_vm0, %v334_v28  ;;  %681 = vadd.xlane.f32.xlu1 %v680_v36 }
  0x25   : > { %1392 = vmatmul.mubr.msk.f32.gmra.mrb[6].mxu1 %vm351_vm0, %v342_v33 }
  0x26   : > { %678 = vadd.xlane.f32.xlu0 %v677_v37 }
  0x28   : > { %687 = vadd.xlane.f32.xlu1 %v686_v42 }
  0x2a   : > { %684 = vadd.xlane.f32.xlu0 %v683_v43 }
  0x2c   : > { %693 = vadd.xlane.f32.xlu1 %v692_v48 }
  0x2e   : > { %690 = vadd.xlane.f32.xlu0 %v689_v49 }
  0x30   : > { %699 = vadd.xlane.f32.xlu1 %v698_v52 }
  0x32   : > { %696 = vadd.xlane.f32.xlu0 %v695_v53 }
  0x34   : > { %705 = vadd.xlane.f32.xlu1 %v704_v58 }
  0x36   : > { %702 = vadd.xlane.f32.xlu0 %v701_v59 }
  0xeb   : > { %v1372_v61 = vpop.f32.mrb[0].mxu0 }
  0xec   : > { %v1384_v62 = vpop.f32.mrb[0].mxu1  ;;  %v472_v63 = vadd.f32 %v1372_v61, %v1867_v60  ;;  %v466_v1 = vpop.f32.mrb[1].mxu0  ;;  %v639_v61 = vld [vmem:[%s1787_s16 + $0x70] sm:$0xff] }
  0xed   : > { %v512_v0 = vadd.f32 %v1384_v62, %v1867_v60  ;;  %v506_v2 = vpop.f32.mrb[1].mxu1  ;;  %v467_v3 = vadd.f32 %v1867_v60, %v466_v1  ;;  %v662_v1 = vmul.f32 %v1799_v9, %v639_v61 }
  0xee   : > { %v507_v4 = vadd.f32 %v1867_v60, %v506_v2  ;;  %546 = vst.msk [vmem:[%s1874_s21 + $0x8] sm:$0xff] %vm351_vm0, %v472_v63  ;;  %v562_v6 = vmul.f32 %v472_v63, %v472_v63 }
  0xef   : > { %554 = vst.msk [vmem:[%s1874_s21 + $0x48] sm:$0xff] %vm351_vm0, %v512_v0  ;;  %v570_v5 = vmul.f32 %v512_v0, %v512_v0  ;;  %545 = vst.msk [vmem:[%s1874_s21] sm:$0xff] %vm351_vm0, %v467_v3  ;;  %v1375_v7 = vpop.f32.mrb[2].mxu0  ;;  %v561_v10 = vmul.f32 %v467_v3, %v467_v3  ;;  %v707_v3 = vsel %vm664_vm1, %v662_v1, 0.0 }
  0xf0   : > { %553 = vst.msk [vmem:[%s1874_s21 + $0x40] sm:$0xff] %vm351_vm0, %v507_v4  ;;  %v1387_v8 = vpop.f32.mrb[2].mxu1  ;;  %v482_v11 = vadd.f32 %v1375_v7, %v1867_v60  ;;  %v476_v12 = vpop.f32.mrb[3].mxu0  ;;  %v580_v14 = vsel %vm351_vm0, %v562_v6, 0.0  ;;  %v569_v22 = vmul.f32 %v507_v4, %v507_v4 }
  0xf1   : > { %v604_v13 = vsel %vm351_vm0, %v570_v5, 0.0  ;;  %v522_v15 = vadd.f32 %v1387_v8, %v1867_v60  ;;  %v516_v16 = vpop.f32.mrb[3].mxu1  ;;  %v477_v17 = vadd.f32 %v1867_v60, %v476_v12  ;;  %581 = vadd.xlane.f32.xlu0 %v580_v14  ;;  %v577_v25 = vsel %vm351_vm0, %v561_v10, 0.0  ;;  %v670_v4 = vpop.xlane.xlu1 %669 }
  0xf2   : > { %605 = vadd.xlane.f32.xlu1 %v604_v13  ;;  %v517_v18 = vadd.f32 %v1867_v60, %v516_v16  ;;  %548 = vst.msk [vmem:[%s1874_s21 + $0x18] sm:$0xff] %vm351_vm0, %v482_v11  ;;  %v564_v19 = vmul.f32 %v482_v11, %v482_v11  ;;  %v601_v33 = vsel %vm351_vm0, %v569_v22, 0.0  ;;  %v667_v5 = vpop.xlane.xlu0 %666 }
  0xf3   : > { %556 = vst.msk [vmem:[%s1874_s21 + $0x58] sm:$0xff] %vm351_vm0, %v522_v15  ;;  %v572_v20 = vmul.f32 %v522_v15, %v522_v15  ;;  %547 = vst.msk [vmem:[%s1874_s21 + $0x10] sm:$0xff] %vm351_vm0, %v477_v17  ;;  %v1378_v21 = vpop.f32.mrb[4].mxu0  ;;  %v563_v36 = vmul.f32 %v477_v17, %v477_v17 }
  0xf4   : > { %555 = vst.msk [vmem:[%s1874_s21 + $0x50] sm:$0xff] %vm351_vm0, %v517_v18  ;;  %v1390_v23 = vpop.f32.mrb[4].mxu1  ;;  %v586_v24 = vsel %vm351_vm0, %v564_v19, 0.0  ;;  %v492_v26 = vadd.f32 %v1378_v21, %v1867_v60  ;;  %v486_v27 = vpop.f32.mrb[5].mxu0  ;;  %v571_v37 = vmul.f32 %v517_v18, %v517_v18 }
  0xf5   : > { %v532_v28 = vadd.f32 %v1390_v23, %v1867_v60  ;;  %v526_v29 = vpop.f32.mrb[5].mxu1  ;;  %578 = vadd.xlane.f32.xlu0 %v577_v25  ;;  %v487_v30 = vadd.f32 %v1867_v60, %v486_v27  ;;  %v610_v32 = vsel %vm351_vm0, %v572_v20, 0.0  ;;  %v583_v46 = vsel %vm351_vm0, %v563_v36, 0.0  ;;  %v676_v6 = vpop.xlane.xlu1 %675 }
  0xf6   : > { %587 = vadd.xlane.f32.xlu1 %v586_v24  ;;  %v527_v31 = vadd.f32 %v1867_v60, %v526_v29  ;;  %550 = vst.msk [vmem:[%s1874_s21 + $0x28] sm:$0xff] %vm351_vm0, %v492_v26  ;;  %v566_v44 = vmul.f32 %v492_v26, %v492_v26  ;;  %v607_v47 = vsel %vm351_vm0, %v571_v37, 0.0  ;;  %v673_v7 = vpop.xlane.xlu0 %672 }
  0xf7   : > { %558 = vst.msk [vmem:[%s1874_s21 + $0x68] sm:$0xff] %vm351_vm0, %v532_v28  ;;  %549 = vst.msk [vmem:[%s1874_s21 + $0x20] sm:$0xff] %vm351_vm0, %v487_v30  ;;  %v1381_v34 = vpop.f32.mrb[6].mxu0  ;;  %v565_v45 = vmul.f32 %v487_v30, %v487_v30  ;;  %v574_v50 = vmul.f32 %v532_v28, %v532_v28 }
  0xf8   : > { %557 = vst.msk [vmem:[%s1874_s21 + $0x60] sm:$0xff] %vm351_vm0, %v527_v31  ;;  %v1393_v35 = vpop.f32.mrb[6].mxu1  ;;  %v502_v38 = vadd.f32 %v1381_v34, %v1867_v60  ;;  %v496_v39 = vpop.f32.mrb[7].mxu0  ;;  %v592_v48 = vsel %vm351_vm0, %v566_v44, 0.0  ;;  %v573_v51 = vmul.f32 %v527_v31, %v527_v31 }
  0xf9   : > { %v542_v40 = vadd.f32 %v1393_v35, %v1867_v60  ;;  %v536_v41 = vpop.f32.mrb[7].mxu1  ;;  %602 = vadd.xlane.f32.xlu0 %v601_v33  ;;  %v497_v42 = vadd.f32 %v1867_v60, %v496_v39  ;;  %v589_v49 = vsel %vm351_vm0, %v565_v45, 0.0  ;;  %v616_v52 = vsel %vm351_vm0, %v574_v50, 0.0  ;;  %v682_v8 = vpop.xlane.xlu1 %681 }
  0xfa   : > { %611 = vadd.xlane.f32.xlu1 %v610_v32  ;;  %v537_v43 = vadd.f32 %v1867_v60, %v536_v41  ;;  %552 = vst.msk [vmem:[%s1874_s21 + $0x38] sm:$0xff] %vm351_vm0, %v502_v38  ;;  %v613_v53 = vsel %vm351_vm0, %v573_v51, 0.0  ;;  %v568_v54 = vmul.f32 %v502_v38, %v502_v38  ;;  %v640_v60 = vld [vmem:[%s1787_s16 + $0x78] sm:$0xff]  ;;  %v679_v10 = vpop.xlane.xlu0 %678 }
  0xfb   : > { %560 = vst.msk [vmem:[%s1874_s21 + $0x78] sm:$0xff] %vm351_vm0, %v542_v40  ;;  %551 = vst.msk [vmem:[%s1874_s21 + $0x30] sm:$0xff] %vm351_vm0, %v497_v42  ;;  %v567_v55 = vmul.f32 %v497_v42, %v497_v42  ;;  %v576_v58 = vmul.f32 %v542_v40, %v542_v40  ;;  %v663_v0 = vmul.f32 %v1799_v9, %v640_v60 }
  0xfc   : > { %559 = vst.msk [vmem:[%s1874_s21 + $0x70] sm:$0xff] %vm351_vm0, %v537_v43  ;;  %v598_v56 = vsel %vm351_vm0, %v568_v54, 0.0  ;;  %v575_v59 = vmul.f32 %v537_v43, %v537_v43 }
  0xfd   : > { %608 = vadd.xlane.f32.xlu0 %v607_v47  ;;  %v595_v57 = vsel %vm351_vm0, %v567_v55, 0.0  ;;  %v622_v62 = vsel %vm351_vm0, %v576_v58, 0.0  ;;  %v710_v2 = vsel %vm664_vm1, %v663_v0, 0.0  ;;  %v688_v11 = vpop.xlane.xlu1 %687 }
  0xfe   : > { %584 = vadd.xlane.f32.xlu1 %v583_v46  ;;  %v619_v63 = vsel %vm351_vm0, %v575_v59, 0.0  ;;  %v685_v12 = vpop.xlane.xlu0 %684 }
 0x101   : > { %590 = vadd.xlane.f32.xlu0 %v589_v49  ;;  %v694_v13 = vpop.xlane.xlu1 %693 }
 0x102   : > { %593 = vadd.xlane.f32.xlu1 %v592_v48  ;;  %v691_v14 = vpop.xlane.xlu0 %690 }
 0x105   : > { %614 = vadd.xlane.f32.xlu0 %v613_v53  ;;  %v700_v9 = vpop.xlane.xlu1 %699 }
 0x106   : > { %617 = vadd.xlane.f32.xlu1 %v616_v52  ;;  %v697_v15 = vpop.xlane.xlu0 %696 }
 0x109   : > { %596 = vadd.xlane.f32.xlu0 %v595_v57  ;;  %v706_v16 = vpop.xlane.xlu1 %705 }
 0x10a   : > { %599 = vadd.xlane.f32.xlu1 %v598_v56  ;;  %v703_v17 = vpop.xlane.xlu0 %702 }
 0x10d   : > { %620 = vadd.xlane.f32.xlu0 %v619_v63 }
 0x10e   : > { %623 = vadd.xlane.f32.xlu1 %v622_v62 }
 0x111   : > { %708 = vadd.xlane.f32.xlu0 %v707_v3 }
 0x112   : > { %711 = vadd.xlane.f32.xlu1 %v710_v2 }
 0x17e   : > { %v582_v19 = vpop.xlane.xlu0 %581 }
 0x17f   : > { %v606_v18 = vpop.xlane.xlu1 %605  ;;  %v714_v21 = vadd.f32 %v670_v4, %v582_v19 }
 0x180   : > { %v722_v20 = vadd.f32 %v694_v13, %v606_v18 }
 0x181   : > { %731 = vst.msk [vmem:[%s1943_s27 + $0x8] sm:$0xff] %vm729_vm2, %v714_v21 }
 0x182   : > { %739 = vst.msk [vmem:[%s1943_s27 + $0x48] sm:$0xff] %vm729_vm2, %v722_v20  ;;  %v579_v23 = vpop.xlane.xlu0 %578 }
 0x183   : > { %v588_v22 = vpop.xlane.xlu1 %587  ;;  %v713_v25 = vadd.f32 %v667_v5, %v579_v23 }
 0x184   : > { %v716_v24 = vadd.f32 %v676_v6, %v588_v22 }
 0x185   : > { %730 = vst.msk [vmem:[%s1943_s27] sm:$0xff] %vm729_vm2, %v713_v25 }
 0x186   : > { %733 = vst.msk [vmem:[%s1943_s27 + $0x18] sm:$0xff] %vm729_vm2, %v716_v24  ;;  %v603_v27 = vpop.xlane.xlu0 %602 }
 0x187   : > { %v612_v26 = vpop.xlane.xlu1 %611  ;;  %v721_v29 = vadd.f32 %v691_v14, %v603_v27 }
 0x188   : > { %v724_v28 = vadd.f32 %v700_v9, %v612_v26 }
 0x189   : > { %738 = vst.msk [vmem:[%s1943_s27 + $0x40] sm:$0xff] %vm729_vm2, %v721_v29 }
 0x18a   : > { %741 = vst.msk [vmem:[%s1943_s27 + $0x58] sm:$0xff] %vm729_vm2, %v724_v28  ;;  %v609_v31 = vpop.xlane.xlu0 %608 }
 0x18b   : > { %v585_v30 = vpop.xlane.xlu1 %584  ;;  %v723_v33 = vadd.f32 %v697_v15, %v609_v31 }
 0x18c   : > { %v715_v32 = vadd.f32 %v673_v7, %v585_v30 }
 0x18d   : > { %740 = vst.msk [vmem:[%s1943_s27 + $0x50] sm:$0xff] %vm729_vm2, %v723_v33 }
 0x18e   : > { %732 = vst.msk [vmem:[%s1943_s27 + $0x10] sm:$0xff] %vm729_vm2, %v715_v32  ;;  %v591_v35 = vpop.xlane.xlu0 %590 }
 0x18f   : > { %v594_v34 = vpop.xlane.xlu1 %593  ;;  %v717_v37 = vadd.f32 %v679_v10, %v591_v35 }
 0x190   : > { %v718_v36 = vadd.f32 %v682_v8, %v594_v34 }
 0x191   : > { %734 = vst.msk [vmem:[%s1943_s27 + $0x20] sm:$0xff] %vm729_vm2, %v717_v37 }
 0x192   : > { %735 = vst.msk [vmem:[%s1943_s27 + $0x28] sm:$0xff] %vm729_vm2, %v718_v36  ;;  %v615_v39 = vpop.xlane.xlu0 %614 }
 0x193   : > { %v618_v38 = vpop.xlane.xlu1 %617  ;;  %v725_v41 = vadd.f32 %v703_v17, %v615_v39 }
 0x194   : > { %v726_v40 = vadd.f32 %v706_v16, %v618_v38 }
 0x195   : > { %742 = vst.msk [vmem:[%s1943_s27 + $0x60] sm:$0xff] %vm729_vm2, %v725_v41 }
 0x196   : > { %743 = vst.msk [vmem:[%s1943_s27 + $0x68] sm:$0xff] %vm729_vm2, %v726_v40  ;;  %v597_v43 = vpop.xlane.xlu0 %596 }
 0x197   : > { %v600_v42 = vpop.xlane.xlu1 %599  ;;  %v719_v45 = vadd.f32 %v685_v12, %v597_v43 }
 0x198   : > { %v720_v44 = vadd.f32 %v688_v11, %v600_v42 }
 0x199   : > { %736 = vst.msk [vmem:[%s1943_s27 + $0x30] sm:$0xff] %vm729_vm2, %v719_v45 }
 0x19a   : > { %737 = vst.msk [vmem:[%s1943_s27 + $0x38] sm:$0xff] %vm729_vm2, %v720_v44  ;;  %v621_v47 = vpop.xlane.xlu0 %620 }
 0x19b   : > { %v624_v46 = vpop.xlane.xlu1 %623 }
 0x19c   : > { %756 = sbr.rel (!%p1760_p4) target bundleno = 468 (0x1d4), region = 44 }
 0x19e   : > { %v709_v49 = vpop.xlane.xlu0 %708 }
 0x19f   : > { %v712_v48 = vpop.xlane.xlu1 %711  ;;  %v727_v51 = vadd.f32 %v709_v49, %v621_v47 }
 0x1a0   : > { %v728_v50 = vadd.f32 %v712_v48, %v624_v46 }
 0x1a1   : > { %744 = vst.msk [vmem:[%s1943_s27 + $0x70] sm:$0xff] %vm729_vm2, %v727_v51 }
 0x1a2   : > { %745 = vst.msk [vmem:[%s1943_s27 + $0x78] sm:$0xff] %vm729_vm2, %v728_v50 }
 0x1a3   : > { %s2185_s30 = smov (!%p759_p8, %s758_s30), 16 }
 0x1a4   : > { %s1316_s12 = sshll.u32 %s2185_s30, 7 }
 0x1a5   : > { %p1319_p9 = scmp.eq.s32.totalorder %s1316_s12, 0 }
 0x1a6   : > { %s1990_s13 = sshrl.u32 (!%p1319_p9), %s2185_s30, 4 }
 0x1a7   : > { %767 = sbr.rel (%p1319_p9) target bundleno = 468 (0x1d4), region = 48  ;;  %p1320_p10 = scmp.le.s32.totalorder (!%p1319_p9), %s1990_s13, 0 }
 0x1ae   : > { %1198 = sbr.rel (%p1320_p10) target bundleno = 447 (0x1bf), region = 199  ;;  %s2175_s14 = smov (!%p1320_p10), %s1984_s11 }
 0x1af   : > { %s2176_s15 = smov (!%p1320_p10), %s1874_s21  ;;  %s1999_s16 = smov (!%p1320_p10), 0  }
 0x1b0   : > { %s2001_s17 = smov (!%p1320_p10), 0  }
 0x1b5 LB: >> { %v859_v52 = vld [vmem:[%s1642_s15] sm:$0xff]  ;;  %v861_v53 = vld [vmem:[%s1642_s15 + $0x8] sm:$0xff]  ;;  %v863_v54 = vld [vmem:[%s1642_s15 + $0x10] sm:$0xff]  ;;  %s891_s18 = sadd.s32 1, %s1646_s16  ;;  %s853_s17 = sadd.s32 1, %s1650_s17   ;;  %s1650_s17 = sphi %s2001_s17, %s853_s17   ;;  %s1646_s16 = sphi %s1999_s16, %s2177_s16   ;;  %s1642_s15 = sphi %s2176_s15, %s896_s15   ;;  %s1638_s14 = sphi %s2175_s14, %s897_s14  }
 0x1b6   : >> { %860 = vst [vmem:[%s1638_s14] sm:$0xff] %v859_v52  ;;  %862 = vst [vmem:[%s1638_s14 + $0x8] sm:$0xff] %v861_v53  ;;  %v865_v55 = vld [vmem:[%s1642_s15 + $0x18] sm:$0xff]  ;;  %v867_v56 = vld [vmem:[%s1642_s15 + $0x20] sm:$0xff]  ;;  %p892_p11 = scmp.ge.s32.totalorder %s891_s18, %s1990_s13  ;;  %p852_p12 = scmp.ge.s32.totalorder %s853_s17, %s1990_s13 }
 0x1b7   : >> { %864 = vst [vmem:[%s1638_s14 + $0x10] sm:$0xff] %v863_v54  ;;  %v869_v57 = vld [vmem:[%s1642_s15 + $0x28] sm:$0xff]  ;;  %866 = vst [vmem:[%s1638_s14 + $0x18] sm:$0xff] %v865_v55  ;;  %v871_v58 = vld [vmem:[%s1642_s15 + $0x30] sm:$0xff] }
 0x1b8   : >> { %868 = vst [vmem:[%s1638_s14 + $0x20] sm:$0xff] %v867_v56  ;;  %870 = vst [vmem:[%s1638_s14 + $0x28] sm:$0xff] %v869_v57  ;;  %v873_v59 = vld [vmem:[%s1642_s15 + $0x38] sm:$0xff]  ;;  %v875_v60 = vld [vmem:[%s1642_s15 + $0x40] sm:$0xff]  ;;  %s2187_s18 = smov (%p892_p11, %s891_s18), 0  ;;  %855 = sbr.rel (!%p852_p12) target bundleno = 437 (0x1b5), region = 205 }
 0x1b9   : >> { %872 = vst [vmem:[%s1638_s14 + $0x30] sm:$0xff] %v871_v58  ;;  %874 = vst [vmem:[%s1638_s14 + $0x38] sm:$0xff] %v873_v59  ;;  %v877_v61 = vld [vmem:[%s1642_s15 + $0x48] sm:$0xff]  ;;  %v879_v62 = vld [vmem:[%s1642_s15 + $0x50] sm:$0xff]  ;;  %s1321_s19 = sshll.u32 %s2187_s18, 7  ;;  %s2177_s16 = smov %s2187_s18 }
 0x1ba   : >> { %876 = vst [vmem:[%s1638_s14 + $0x40] sm:$0xff] %v875_v60  ;;  %v881_v63 = vld [vmem:[%s1642_s15 + $0x58] sm:$0xff]  ;;  %878 = vst [vmem:[%s1638_s14 + $0x48] sm:$0xff] %v877_v61  ;;  %v883_v0 = vld [vmem:[%s1642_s15 + $0x60] sm:$0xff] }
 0x1bb   : >> { %880 = vst [vmem:[%s1638_s14 + $0x50] sm:$0xff] %v879_v62  ;;  %882 = vst [vmem:[%s1638_s14 + $0x58] sm:$0xff] %v881_v63  ;;  %v885_v1 = vld [vmem:[%s1642_s15 + $0x68] sm:$0xff]  ;;  %v887_v2 = vld [vmem:[%s1642_s15 + $0x70] sm:$0xff] }
 0x1bc   : >> { %884 = vst [vmem:[%s1638_s14 + $0x60] sm:$0xff] %v883_v0  ;;  %886 = vst [vmem:[%s1638_s14 + $0x68] sm:$0xff] %v885_v1  ;;  %v889_v3 = vld [vmem:[%s1642_s15 + $0x78] sm:$0xff]  ;;  %s896_s15 = scalar_lea.vmem %s1874_s21, %s1321_s19 [#allocation2]  }
 0x1bd   : >> { %888 = vst [vmem:[%s1638_s14 + $0x70] sm:$0xff] %v887_v2  ;;  %890 = vst [vmem:[%s1638_s14 + $0x78] sm:$0xff] %v889_v3  ;;  %s897_s14 = scalar_lea.vmem %s1984_s11, %s1321_s19  }
 0x1bf PF: > { %s2059_s20 = sand.u32 15, %s2185_s30   ;;  %s1346_s23 = sshll.u32 %s1990_s13, 7 }
 0x1c0   : > { %s902_s26 = scalar_lea.vmem %s1874_s21, %s1346_s23 [#allocation2]   ;;  %s904_s7 = scalar_lea.vmem %s1984_s11, %s1346_s23  }
 0x1c1   : > { %p1326_p13 = scmp.le.s32.totalorder %s2059_s20, 0 }
 0x1c2   : > { %s1652_s9 = smov (!%p1326_p13), %s904_s7   ;;  %s1656_s10 = smov (!%p1326_p13), %s902_s26  }
 0x1c3   : > { %1212 = sbr.rel (%p1326_p13) target bundleno = 468 (0x1d4), region = 210  ;;  %s1660_s12 = smov (!%p1326_p13), 0  }
 0x1c4   : > { %s1664_s18 = smov (!%p1326_p13), 0  }
 0x1ca LB: >> { %v914_v4 = vld [vmem:[%s1658_s10] sm:$0xff]  ;;  %s916_s30 = sadd.s32 1, %s1662_s12  ;;  %s908_s18 = sadd.s32 1, %s1666_s18   ;;  %s1666_s18 = sphi %s1664_s18, %s908_s18   ;;  %s1662_s12 = sphi %s1660_s12, %s1661_s12   ;;  %s1658_s10 = sphi %s1656_s10, %s921_s10   ;;  %s1654_s9 = sphi %s1652_s9, %s922_s9  }
 0x1cb   : >> { %915 = vst [vmem:[%s1654_s9] sm:$0xff] %v914_v4  ;;  %p917_p0 = scmp.ge.s32.totalorder %s916_s30, %s2059_s20  ;;  %p907_p1 = scmp.ge.s32.totalorder %s908_s18, %s2059_s20 }
 0x1cd   : >> { %s2189_s30 = smov (%p917_p0, %s916_s30), 0  ;;  %910 = sbr.rel (!%p907_p1) target bundleno = 458 (0x1ca), region = 216 }
 0x1ce   : >> { %s1327_s21 = sshll.u32 %s2189_s30, 3  ;;  %s1661_s12 = smov %s2189_s30  }
 0x1cf   : >> { %s921_s10 = scalar_lea.vmem %s902_s26, %s1327_s21 [#allocation2]   ;;  %s922_s9 = scalar_lea.vmem %s904_s7, %s1327_s21  }
 0x1d4 PF: > { %928 = sbr.rel (!%p1760_p4) target bundleno = 524 (0x20c), region = 96  ;;  %s930_s11 = ssub.s32 (%p1760_p4), 38, %s1768_s8 }
 0x1d5   : > { %s1348_s13 = sshll.u32 (%p1760_p4), %s1748_s24, 7  ;;  %p931_p2 = scmp.lt.s32.totalorder (%p1760_p4), %s930_s11, 16 }
 0x1d6   : > { %s2074_s16 = scalar_lea.vmem (%p1760_p4), %s2173_s6, %s1348_s13  }
 0x1db   : > { %s2191_s11 = smov (!%p931_p2, %s930_s11), 16 }
 0x1dc   : > { %s1330_s17 = sshll.u32 %s2191_s11, 7 }
 0x1dd   : > { %p1333_p3 = scmp.eq.s32.totalorder %s1330_s17, 0 }
 0x1de   : > { %s2080_s19 = sshrl.u32 (!%p1333_p3), %s2191_s11, 4 }
 0x1df   : > { %939 = sbr.rel (%p1333_p3) target bundleno = 524 (0x20c), region = 100  ;;  %p1334_p4 = scmp.le.s32.totalorder (!%p1333_p3), %s2080_s19, 0 }
 0x1e6   : > { %1226 = sbr.rel (%p1334_p4) target bundleno = 503 (0x1f7), region = 221  ;;  %s2178_s24 = smov (!%p1334_p4), %s2074_s16 }
 0x1e7   : > { %s2179_s29 = smov (!%p1334_p4), %s1943_s27  ;;  %s2089_s8 = smov (!%p1334_p4), 0  }
 0x1e8   : > { %s2091_s20 = smov (!%p1334_p4), 0  }
 0x1ed LB: >> { %v1031_v5 = vld [vmem:[%s1674_s29] sm:$0xff]  ;;  %v1033_v6 = vld [vmem:[%s1674_s29 + $0x8] sm:$0xff]  ;;  %v1035_v7 = vld [vmem:[%s1674_s29 + $0x10] sm:$0xff]  ;;  %s1063_s23 = sadd.s32 1, %s1678_s8  ;;  %s1025_s20 = sadd.s32 1, %s1682_s20   ;;  %s1682_s20 = sphi %s2091_s20, %s1025_s20   ;;  %s1678_s8 = sphi %s2089_s8, %s2180_s8   ;;  %s1674_s29 = sphi %s2179_s29, %s1068_s29   ;;  %s1670_s24 = sphi %s2178_s24, %s1069_s24  }
 0x1ee   : >> { %1032 = vst [vmem:[%s1670_s24] sm:$0xff] %v1031_v5  ;;  %1034 = vst [vmem:[%s1670_s24 + $0x8] sm:$0xff] %v1033_v6  ;;  %v1037_v8 = vld [vmem:[%s1674_s29 + $0x18] sm:$0xff]  ;;  %v1039_v10 = vld [vmem:[%s1674_s29 + $0x20] sm:$0xff]  ;;  %p1064_p5 = scmp.ge.s32.totalorder %s1063_s23, %s2080_s19  ;;  %p1024_p6 = scmp.ge.s32.totalorder %s1025_s20, %s2080_s19 }
 0x1ef   : >> { %1036 = vst [vmem:[%s1670_s24 + $0x10] sm:$0xff] %v1035_v7  ;;  %v1041_v11 = vld [vmem:[%s1674_s29 + $0x28] sm:$0xff]  ;;  %1038 = vst [vmem:[%s1670_s24 + $0x18] sm:$0xff] %v1037_v8  ;;  %v1043_v12 = vld [vmem:[%s1674_s29 + $0x30] sm:$0xff] }
 0x1f0   : >> { %1040 = vst [vmem:[%s1670_s24 + $0x20] sm:$0xff] %v1039_v10  ;;  %1042 = vst [vmem:[%s1670_s24 + $0x28] sm:$0xff] %v1041_v11  ;;  %v1045_v13 = vld [vmem:[%s1674_s29 + $0x38] sm:$0xff]  ;;  %v1047_v14 = vld [vmem:[%s1674_s29 + $0x40] sm:$0xff]  ;;  %s2193_s23 = smov (%p1064_p5, %s1063_s23), 0  ;;  %1027 = sbr.rel (!%p1024_p6) target bundleno = 493 (0x1ed), region = 227 }
 0x1f1   : >> { %1044 = vst [vmem:[%s1670_s24 + $0x30] sm:$0xff] %v1043_v12  ;;  %1046 = vst [vmem:[%s1670_s24 + $0x38] sm:$0xff] %v1045_v13  ;;  %v1049_v9 = vld [vmem:[%s1674_s29 + $0x48] sm:$0xff]  ;;  %v1051_v15 = vld [vmem:[%s1674_s29 + $0x50] sm:$0xff]  ;;  %s1335_s26 = sshll.u32 %s2193_s23, 7  ;;  %s2180_s8 = smov %s2193_s23 }
 0x1f2   : >> { %1048 = vst [vmem:[%s1670_s24 + $0x40] sm:$0xff] %v1047_v14  ;;  %v1053_v16 = vld [vmem:[%s1674_s29 + $0x58] sm:$0xff]  ;;  %1050 = vst [vmem:[%s1670_s24 + $0x48] sm:$0xff] %v1049_v9  ;;  %v1055_v17 = vld [vmem:[%s1674_s29 + $0x60] sm:$0xff] }
 0x1f3   : >> { %1052 = vst [vmem:[%s1670_s24 + $0x50] sm:$0xff] %v1051_v15  ;;  %1054 = vst [vmem:[%s1670_s24 + $0x58] sm:$0xff] %v1053_v16  ;;  %v1057_v18 = vld [vmem:[%s1674_s29 + $0x68] sm:$0xff]  ;;  %v1059_v19 = vld [vmem:[%s1674_s29 + $0x70] sm:$0xff] }
 0x1f4   : >> { %1056 = vst [vmem:[%s1670_s24 + $0x60] sm:$0xff] %v1055_v17  ;;  %1058 = vst [vmem:[%s1670_s24 + $0x68] sm:$0xff] %v1057_v18  ;;  %v1061_v20 = vld [vmem:[%s1674_s29 + $0x78] sm:$0xff]  ;;  %s1068_s29 = scalar_lea.vmem %s1943_s27, %s1335_s26 [#allocation3]  }
 0x1f5   : >> { %1060 = vst [vmem:[%s1670_s24 + $0x70] sm:$0xff] %v1059_v19  ;;  %1062 = vst [vmem:[%s1670_s24 + $0x78] sm:$0xff] %v1061_v20  ;;  %s1069_s24 = scalar_lea.vmem %s2074_s16, %s1335_s26  }
 0x1f7 PF: > { %s2149_s7 = sand.u32 15, %s2191_s11   ;;  %s1349_s9 = sshll.u32 %s2080_s19, 7 }
 0x1f8   : > { %s1074_s10 = scalar_lea.vmem %s1943_s27, %s1349_s9 [#allocation3]   ;;  %s1076_s12 = scalar_lea.vmem %s2074_s16, %s1349_s9  }
 0x1f9   : > { %p1340_p7 = scmp.le.s32.totalorder %s2149_s7, 0 }
 0x1fa   : > { %s1684_s18 = smov (!%p1340_p7), %s1076_s12   ;;  %s1688_s30 = smov (!%p1340_p7), %s1074_s10  }
 0x1fb   : > { %1240 = sbr.rel (%p1340_p7) target bundleno = 524 (0x20c), region = 232  ;;  %s1692_s21 = smov (!%p1340_p7), 0  }
 0x1fc   : > { %s1696_s13 = smov (!%p1340_p7), 0  }
 0x202 LB: >> { %v1086_v21 = vld [vmem:[%s1690_s30] sm:$0xff]  ;;  %s1088_s11 = sadd.s32 1, %s1694_s21  ;;  %s1080_s13 = sadd.s32 1, %s1698_s13   ;;  %s1698_s13 = sphi %s1696_s13, %s1080_s13   ;;  %s1694_s21 = sphi %s1692_s21, %s1693_s21   ;;  %s1690_s30 = sphi %s1688_s30, %s1093_s30   ;;  %s1686_s18 = sphi %s1684_s18, %s1094_s18  }
 0x203   : >> { %1087 = vst [vmem:[%s1686_s18] sm:$0xff] %v1086_v21  ;;  %p1089_p8 = scmp.ge.s32.totalorder %s1088_s11, %s2149_s7  ;;  %p1079_p9 = scmp.ge.s32.totalorder %s1080_s13, %s2149_s7 }
 0x205   : >> { %s2195_s11 = smov (%p1089_p8, %s1088_s11), 0  ;;  %1082 = sbr.rel (!%p1079_p9) target bundleno = 514 (0x202), region = 238 }
 0x206   : >> { %s1341_s27 = sshll.u32 %s2195_s11, 3  ;;  %s1693_s21 = smov %s2195_s11  }
 0x207   : >> { %s1093_s30 = scalar_lea.vmem %s1074_s10, %s1341_s27 [#allocation3]   ;;  %s1094_s18 = scalar_lea.vmem %s1076_s12, %s1341_s27  }
 0x20c PF: > { %p14_p10 = scmp.ge.s32.totalorder %s1750_s25, 5   ;;  %s2181_s21 = smov %s1630_s22 }
 0x20d   : > { %s2182_s22 = smov %s1758_s28  ;;  %s2183_s23 = smov %s1750_s25 }
 0x20e   :  { %16 = sbr.rel (!%p14_p10) target bundleno = 2 (0x2), region = 249 }

</bundles_post_ra>
